<compile_context>
chip_gen: v7x
topology: tpu7x:2x2x1
jax: 0.10.0
libtpu: 0.0.40
codegen_flags: <defaults>
</compile_context>

<pallas_src>
import jax
import jax.numpy as jnp
from jax.experimental import pallas as pl
from jax.experimental.pallas import tpu as pltpu


def _planar_flow_kernel(w_ref, uhat_ref, scal_ref, z_ref, f_ref, logdet_ref):
    w = w_ref[...]            # (1, D)      f32
    u_hat = uhat_ref[...]     # (1, D)      f32
    b = scal_ref[0]           # scalar      f32 (SMEM)
    wu_hat = scal_ref[1]      # scalar w·u_hat (SMEM)
    z = z_ref[...]            # (TILE_N, D) f32

    # lin = z @ w + b, kept as a (TILE_N, 1) column (PyTorch's unsqueeze(1)).
    lin = jnp.sum(z * w, axis=-1, keepdims=True) + b     # (TILE_N, 1)
    t = jnp.tanh(lin)                                    # (TILE_N, 1)

    # f = z + u_hat * tanh(lin)
    f_ref[...] = z + u_hat * t                           # (TILE_N, D)

    # phi @ u_hat == (1 - tanh(lin)^2) * (w · u_hat)  (algebraic identity; the
    # N x D `phi` tensor and its row-reduction are never materialized).
    phi_u = (1.0 - t * t) * wu_hat                       # (TILE_N, 1)
    logdet_ref[...] = jnp.log(jnp.abs(1.0 + phi_u) + 1e-20)


def _choose_tile_n(N, D):
    # Double-buffered z-in + f-out footprint ~= 16 * TILE_N * D bytes.
    # Keep TILE_N * D <= 512K elements (~8 MiB) so the default scoped VMEM
    # limit is safe on v5e (16 MiB) / v6e / v7x, while tiles stay big enough
    # (hundreds of rows) to amortize per-grid-step overhead.
    budget_elems = 512 * 1024
    t = max(8, min(1024, budget_elems // max(D, 1)))
    t = max(8, (t // 8) * 8)                 # sublane-aligned
    n_pad8 = ((N + 7) // 8) * 8
    return min(t, max(8, n_pad8))            # don't exceed the (padded) problem


def planar_flow(z, w, u, b):
    """z: [N, D] f32; w,u: [D] f32; b: [1] or scalar f32 -> (f [N,D], log_det [N])."""
    N, D = z.shape
    z = z.astype(jnp.float32)
    w1 = jnp.asarray(w, jnp.float32).reshape(D)
    u1 = jnp.asarray(u, jnp.float32).reshape(D)
    b0 = jnp.asarray(b, jnp.float32).reshape(-1)[0]

    # Scalar reparameterization, done once in the wrapper (matches torch exactly).
    dot = jnp.sum(w1 * u1)
    scale = (jnp.log(1.0 + jnp.exp(dot) + 1e-20) - 1.0 - dot) / jnp.sum(w1 * w1)
    u_hat = u1 + scale * w1                          # (D,)
    wu_hat = jnp.sum(w1 * u_hat)                     # scalar: w · u_hat

    w2 = w1.reshape(1, D)
    uhat2 = u_hat.reshape(1, D)
    scal = jnp.stack([b0, wu_hat]).astype(jnp.float32)   # (2,) -> SMEM

    tile_n = _choose_tile_n(N, D)
    n_pad = pl.cdiv(N, tile_n) * tile_n
    z_p = jnp.pad(z, ((0, n_pad - N), (0, 0))) if n_pad != N else z
    grid = (n_pad // tile_n,)

    f_p, logdet_p = pl.pallas_call(
        _planar_flow_kernel,
        grid=grid,
        out_shape=(
            jax.ShapeDtypeStruct((n_pad, D), jnp.float32),
            jax.ShapeDtypeStruct((n_pad, 1), jnp.float32),
        ),
        in_specs=[
            pl.BlockSpec((1, D), lambda i: (0, 0)),                 # w
            pl.BlockSpec((1, D), lambda i: (0, 0)),                 # u_hat
            pl.BlockSpec(memory_space=pltpu.MemorySpace.SMEM),      # (b, w·u_hat)
            pl.BlockSpec((tile_n, D), lambda i: (i, 0)),            # z tile
        ],
        out_specs=(
            pl.BlockSpec((tile_n, D), lambda i: (i, 0)),            # f tile
            pl.BlockSpec((tile_n, 1), lambda i: (i, 0)),            # log_det tile
        ),
        compiler_params=pltpu.CompilerParams(
            dimension_semantics=("parallel",),
        ),
    )(w2, uhat2, scal, z_p)

    return f_p[:N], logdet_p[:N, 0]


def _planar_flow_ref(z, w, u, b):
    # Pure-JAX reference matching the PyTorch forward exactly.
    dot = jnp.sum(w * u)
    u_hat = u + (jnp.log(1.0 + jnp.exp(dot) + 1e-20) - 1.0 - dot) * w / jnp.sum(w ** 2)
    lin = (z @ w + b)[:, None]
    f = z + u_hat * jnp.tanh(lin)
    phi = (1.0 - jnp.tanh(lin) ** 2) * w
    log_det = jnp.log(jnp.abs(1.0 + phi @ u_hat) + 1e-20)
    return f, log_det


if __name__ == "__main__":
    key = jax.random.PRNGKey(0)

    # Case 1: small shape consistent with the module (N=8 rows, D=32 features).
    N, D = 8, 32
    kz, kw, ku, kb = jax.random.split(key, 4)
    z = jax.random.normal(kz, (N, D), dtype=jnp.float32)
    w = jax.random.normal(kw, (D,), dtype=jnp.float32)
    u = jax.random.normal(ku, (D,), dtype=jnp.float32)
    b = jax.random.normal(kb, (1,), dtype=jnp.float32)

    f, log_det = planar_flow(z, w, u, b)
    jax.block_until_ready((f, log_det))
    f_ref, ld_ref = _planar_flow_ref(z, w, u, b[0])
    assert f.shape == (N, D) and log_det.shape == (N,)
    assert jnp.allclose(f, f_ref, rtol=1e-5, atol=1e-5)
    assert jnp.allclose(log_det, ld_ref, rtol=1e-5, atol=1e-5)

    # Case 2: N not a multiple of the tile / sublane count (exercises padding).
    N2 = 20
    kz2 = jax.random.fold_in(key, 7)
    z2 = jax.random.normal(kz2, (N2, D), dtype=jnp.float32)
    f2, ld2 = planar_flow(z2, w, u, b)
    jax.block_until_ready((f2, ld2))
    f2_ref, ld2_ref = _planar_flow_ref(z2, w, u, b[0])
    assert f2.shape == (N2, D) and ld2.shape == (N2,)
    assert jnp.allclose(f2, f2_ref, rtol=1e-5, atol=1e-5)
    assert jnp.allclose(ld2, ld2_ref, rtol=1e-5, atol=1e-5)

    print("KERNEL_OK")
</pallas_src>

<mosaic_0001>
module attributes {stable_mosaic.version = 11 : i64} {
  func.func @_planar_flow_kernel(%arg0: i32, %arg1: memref<1x32xf32, #tpu.memory_space<vmem>>, %arg2: memref<1x32xf32, #tpu.memory_space<vmem>>, %arg3: memref<2xf32, #tpu.memory_space<smem>>, %arg4: memref<8x32xf32, #tpu.memory_space<vmem>>, %arg5: memref<8x32xf32, #tpu.memory_space<vmem>>, %arg6: memref<8x1xf32, #tpu.memory_space<vmem>>) attributes {dimension_semantics = [#tpu.dimension_semantics<parallel>], iteration_bounds = array<i64: 1>, scalar_prefetch = 0 : i64, scratch_operands = 0 : i64, tpu.core_type = #tpu.core_type<tc>, window_params = [{pipeline_mode = #tpu.pipeline_mode<synchronous>, transform_indices = @transform_0, window_bounds = array<i64: 1, 32>}, {pipeline_mode = #tpu.pipeline_mode<synchronous>, transform_indices = @transform_1, window_bounds = array<i64: 1, 32>}, {transform_indices = @transform_2, window_bounds = array<i64: 2>}, {transform_indices = @transform_3, window_bounds = array<i64: 8, 32>}, {transform_indices = @transform_4, window_bounds = array<i64: 8, 32>}, {transform_indices = @transform_5, window_bounds = array<i64: 8, 1>}]} {
    %c0 = arith.constant 0 : index
    %c0_0 = arith.constant 0 : index
    %0 = vector.load %arg1[%c0, %c0_0] : memref<1x32xf32, #tpu.memory_space<vmem>>, vector<1x32xf32>
    %c0_1 = arith.constant 0 : index
    %c0_2 = arith.constant 0 : index
    %1 = vector.load %arg2[%c0_1, %c0_2] : memref<1x32xf32, #tpu.memory_space<vmem>>, vector<1x32xf32>
    %c0_3 = arith.constant 0 : index
    %2 = memref.load %arg3[%c0_3] : memref<2xf32, #tpu.memory_space<smem>>
    %c1 = arith.constant 1 : index
    %3 = memref.load %arg3[%c1] : memref<2xf32, #tpu.memory_space<smem>>
    %c0_4 = arith.constant 0 : index
    %c0_5 = arith.constant 0 : index
    %4 = vector.load %arg4[%c0_4, %c0_5] : memref<8x32xf32, #tpu.memory_space<vmem>>, vector<8x32xf32>
    %5 = vector.broadcast %0 : vector<1x32xf32> to vector<8x32xf32>
    %6 = arith.mulf %4, %5 : vector<8x32xf32>
    %cst = arith.constant dense<0.000000e+00> : vector<8xf32>
    %7 = vector.multi_reduction <add>, %6, %cst [1] : vector<8x32xf32> to vector<8xf32>
    %8 = vector.shape_cast %7 : vector<8xf32> to vector<8x1xf32>
    %9 = vector.broadcast %2 : f32 to vector<8x1xf32>
    %10 = arith.addf %8, %9 : vector<8x1xf32>
    %11 = math.tanh %10 : vector<8x1xf32>
    %12 = vector.broadcast %1 : vector<1x32xf32> to vector<8x32xf32>
    %13 = vector.broadcast %11 : vector<8x1xf32> to vector<8x32xf32>
    %14 = arith.mulf %12, %13 : vector<8x32xf32>
    %15 = arith.addf %4, %14 : vector<8x32xf32>
    %c0_6 = arith.constant 0 : index
    %c0_7 = arith.constant 0 : index
    %16 = vector.load %arg5[%c0_6, %c0_7] : memref<8x32xf32, #tpu.memory_space<vmem>>, vector<8x32xf32>
    tpu.vector_store %arg5[%c0_6, %c0_7], %15 {strides = array<i32>} : memref<8x32xf32, #tpu.memory_space<vmem>>, vector<8x32xf32>,
    %17 = arith.mulf %11, %11 : vector<8x1xf32>
    %cst_8 = arith.constant 1.000000e+00 : f32
    %18 = vector.broadcast %cst_8 : f32 to vector<8x1xf32>
    %19 = arith.subf %18, %17 : vector<8x1xf32>
    %20 = vector.broadcast %3 : f32 to vector<8x1xf32>
    %21 = arith.mulf %19, %20 : vector<8x1xf32>
    %cst_9 = arith.constant 1.000000e+00 : f32
    %22 = vector.broadcast %cst_9 : f32 to vector<8x1xf32>
    %23 = arith.addf %22, %21 : vector<8x1xf32>
    %24 = math.absf %23 : vector<8x1xf32>
    %cst_10 = arith.constant 9.99999968E-21 : f32
    %25 = vector.broadcast %cst_10 : f32 to vector<8x1xf32>
    %26 = arith.addf %24, %25 : vector<8x1xf32>
    %27 = math.log %26 : vector<8x1xf32>
    %c0_11 = arith.constant 0 : index
    %c0_12 = arith.constant 0 : index
    %28 = vector.load %arg6[%c0_11, %c0_12] : memref<8x1xf32, #tpu.memory_space<vmem>>, vector<8x1xf32>
    tpu.vector_store %arg6[%c0_11, %c0_12], %27 {strides = array<i32>} : memref<8x1xf32, #tpu.memory_space<vmem>>, vector<8x1xf32>,
    return
  }
  func.func @transform_0(%arg0: i32) -> (i32, i32) {
    %c0_i32 = arith.constant 0 : i32
    %c0_i32_0 = arith.constant 0 : i32
    %c0_i32_1 = arith.constant 0 : i32
    return %c0_i32, %c0_i32_0 : i32, i32
  }
  func.func @transform_1(%arg0: i32) -> (i32, i32) {
    %c0_i32 = arith.constant 0 : i32
    %c0_i32_0 = arith.constant 0 : i32
    %c0_i32_1 = arith.constant 0 : i32
    return %c0_i32, %c0_i32_0 : i32, i32
  }
  func.func @transform_2(%arg0: i32) -> i32 {
    %c0_i32 = arith.constant 0 : i32
    %c0_i32_0 = arith.constant 0 : i32
    return %c0_i32 : i32
  }
  func.func @transform_3(%arg0: i32) -> (i32, i32) {
    %c0_i32 = arith.constant 0 : i32
    %c0_i32_0 = arith.constant 0 : i32
    return %arg0, %c0_i32 : i32, i32
  }
  func.func @transform_4(%arg0: i32) -> (i32, i32) {
    %c0_i32 = arith.constant 0 : i32
    %c0_i32_0 = arith.constant 0 : i32
    return %arg0, %c0_i32 : i32, i32
  }
  func.func @transform_5(%arg0: i32) -> (i32, i32) {
    %c0_i32 = arith.constant 0 : i32
    %c0_i32_0 = arith.constant 0 : i32
    return %arg0, %c0_i32 : i32, i32
  }
}

</mosaic_0001>

<bundles_post_ra>
// kernel: tpu_custom_call.1
= control target key start
LH: loop header
LB: loop body
LE: loop exit
PB: predicated region body
PF: predicated region fallthrough
CT: control target
= control target key end

     0   :  { %11 = vsyncpa [#allocation3], 0  ;;  %s247_s0 = inlined_call_operand.hbm [shape: f32[1,32], index: 0, kind: input, shape index: {}]   ;;  %s248_s1 = inlined_call_operand.vmem [shape: f32[1,32], index: 1, kind: input, shape index: {}]   ;;  %s249_s2 = inlined_call_operand.vmem [shape: f32[2], index: 2, kind: input, shape index: {}]   ;;  %s250_s3 = inlined_call_operand.vmem [shape: f32[8,32], index: 3, kind: input, shape index: {}]   ;;  %s251_s4 = inlined_call_operand.hbm [shape: f32[8,32], index: 4, kind: output, shape index: {0}]   ;;  %s252_s5 = inlined_call_operand.vmem [shape: f32[8,1], index: 5, kind: output, shape index: {1}]  }
   0x1   :  { %12 = vsyncpa [#allocation5], 0 }
   0x2   :  { %13 = vsyncpa [#allocation4], 0  ;;  %s32_s20 = sshll.u32 %s249_s2, 4  ;;  %s176_s21 = smov [#allocation2]   ;;  %s33_s20 = int_to_ptr.vmem [resolvable:$true] %s32_s20 }
   0x3   :  { %s20_s22 = sshll.u32 %s176_s21, 4  ;;  %s114_s25 = scalar_lea.hbm %s247_s0, 16  ;;  %s21_s22 = int_to_ptr.vmem [resolvable:$true] %s20_s22 }
   0x4   :  { %p115_p0 = scmp.ne.s32.totalorder %s247_s0, %s114_s25  ;;  %p118_p1 = scmp.lt.u32.totalorder %s114_s25, %s247_s0 }
   0x6   :  { %p120_p2 = pnand %p118_p1, %p115_p0 }
   0x8   :  { %123 = shalt.err (!%p120_p2)
}
   0x9   :  { %s124_s30 = scalar_lea.vmem %s21_s22, 16  ;;  %s128_s2 = scalar_lea.vmem %s21_s22, 32 }
   0xa   :  { %p125_p3 = scmp.ne.s32.totalorder %s21_s22, %s124_s30  ;;  %p129_p4 = scmp.lt.s32.totalorder %s21_s22, %s21_s22 }
   0xb   :  { %p130_p5 = scmp.lt.s32.totalorder %s128_s2, %s124_s30 }
   0xd   :  { %p131_p6 = por %p130_p5, %p129_p4 }
   0xf   :  { %p132_p7 = pnand %p131_p6, %p125_p3 }
  0x11   :  { %135 = shalt.err (!%p132_p7)
}
  0x12   :  { %23 = dma.hbm_to_vmem [thread:$0]  %s247_s0, 16, %s21_s22, [#allocation3]  }
  0x13   :  { %s136_s8 = scalar_lea.vmem %s33_s20, 16  ;;  %p141_p9 = scmp.lt.s32.totalorder %s33_s20, %s33_s20 }
  0x14   :  { %p137_p8 = scmp.ne.s32.totalorder %s33_s20, %s136_s8  ;;  %p142_p10 = scmp.lt.s32.totalorder %s136_s8, %s136_s8 }
  0x16   :  { %p143_p11 = por %p142_p10, %p141_p9 }
  0x18   :  { %p144_p12 = pnand %p143_p11, %p137_p8 }
  0x1a   :  { %147 = shalt.err (!%p144_p12)
}
  0x1b   :  { %s177_s9 = smov [#allocation6]  }
  0x1c   :  { %35 = dma.vmem_to_smem %s33_s20, 16, %s177_s9, [#allocation5]  }
  0x1d   :  { %170 = dma.done.wait [#allocation3], 16  }
  0x1e   :  { %171 = vsyncadd [#allocation3], 4294967280 }
  0x1f   :  { %172 = dma.done.wait [#allocation5], 16  }
  0x20   :  { %173 = vsyncadd [#allocation5], 4294967280 }
  0x21   :  { %44 = sfence }
  0x22   :  { %v105_v0 = vld [vmem:[#allocation2] ss:$0 sm:$0xff]  ;;  %vm57_vm0 = vcmask 261120   ;;  %s47_s0 = sld [smem:[#allocation6]]  ;;  %s104_s12 = sld [smem:[#allocation6 + $0x1]] }
  0x23   :  { %v49_v1 = vld [vmem:[%s250_s3] sm:$0xff]  ;;  %s178_s15 = smov [#allocation7]  }
  0x24   :  { %v56_v2 = vmul.f32 %v105_v0, %v49_v1  ;;  %v106_v7 = vld [vmem:[%s248_s1] ss:$0 sm:$0xff]  ;;  %s90_s16 = sshll.u32 %s178_s15, 4  ;;  %s91_s16 = int_to_ptr.vmem [resolvable:$true] %s90_s16 }
  0x25   :  { %s148_s3 = scalar_lea.vmem %s91_s16, 128  ;;  %p153_p0 = scmp.lt.s32.totalorder %s91_s16, %s91_s16 }
  0x26   :  { %v58_v3 = vsel %vm57_vm0, %v56_v2, 0.0  ;;  %p149_p13 = scmp.ne.s32.totalorder %s91_s16, %s148_s3  ;;  %p154_p1 = scmp.lt.s32.totalorder %s148_s3, %s148_s3 }
  0x27   :  { %59 = vadd.xlane.f32.xlu0 %v58_v3 }
  0x28   :  { %v61_v4 = vstv %s47_s0  ;;  %v75_v11 = vstv %s104_s12  ;;  %p155_p2 = por %p154_p1, %p153_p0 }
  0x2a   :  { %p156_p3 = pnand %p155_p2, %p149_p13 }
  0xb4   :  { %v60_v5 = vpop.xlane.xlu0 %59 }
  0xb5   :  { %v62_v6 = vadd.f32 %v61_v4, %v60_v5 }
  0xb7   :  { %110 = vtanh.f32 %v62_v6 }
  0xc1   :  { %v111_v8 = vpop.eup %110 }
  0xc2   :  { %v73_v9 = vmul.f32 %v111_v8, %v111_v8  ;;  %v70_v10 = vmul.f32 %v111_v8, %v106_v7 }
  0xc4   :  { %v74_v12 = vsub.f32 1.0, %v73_v9  ;;  %v71_v13 = vadd.f32 %v70_v10, %v49_v1 }
  0xc6   :  { %v76_v14 = vmul.f32 %v75_v11, %v74_v12  ;;  %72 = vst.msk [vmem:[#allocation7] sm:$0xff] %vm57_vm0, %v71_v13 }
  0xc7   :  { %159 = shalt.err (!%p156_p3)
}
  0xc8   :  { %s160_s18 = scalar_lea.hbm %s251_s4, 128 }
  0xc9   :  { %p161_p4 = scmp.ne.s32.totalorder %s251_s4, %s160_s18  ;;  %p164_p5 = scmp.lt.u32.totalorder %s160_s18, %s251_s4 }
  0xcb   :  { %p166_p6 = pnand %p164_p5, %p161_p4 }
  0xcd   :  { %169 = shalt.err (!%p166_p6)
}
  0xce   :  { %93 = dma.vmem_to_hbm [thread:$0]  %s91_s16, 128, %s251_s4, [#allocation4]   ;;  %v77_v15 = vadd.f32 1.0, %v76_v14  ;;  %vm82_vm1 = vcmask 7168  }
  0xd0   :  { %v78_v16 = vand.u32 2147483647, %v77_v15 }
  0xd2   :  { %v79_v17 = vadd.f32 1e-20, %v78_v16 }
  0xd4   :  { %112 = vlog2.f32 %v79_v17 }
  0xde   :  { %v113_v18 = vpop.eup %112 }
  0xdf   :  { %v81_v19 = vmul.f32 0.6931472, %v113_v18 }
  0xe1   :  { %83 = vst.msk [vmem:[%s252_s5] sm:$0xff] %vm82_vm1, %v81_v19 }
  0xe2   :  { %174 = dma.done.wait [#allocation4], 128  }
  0xe3   :  { %175 = vsyncadd [#allocation4], 4294967168 }
  0xe4   :  { %101 = vsyncpa [#allocation3], 1 }
  0xe5   :  { %102 = vsyncpa [#allocation4], 1 }
  0xe6   :  { %103 = vsyncpa [#allocation5], 1 }

</bundles_post_ra>
